<compile_context>
chip_gen: v5e
topology: v5e:2x2
jax: 0.10.0
libtpu: 0.0.40
codegen_flags: <defaults>
</compile_context>

<pallas_src>
import functools

import jax
import jax.numpy as jnp
from jax.experimental import pallas as pl
from jax.experimental.pallas import tpu as pltpu


HEAD_PAD = 128  # lane-dense width for the focal-head output slab


def _round_up(x, m):
    return ((x + m - 1) // m) * m


# ----------------------------------------------------------------------------
# Pallas kernel: fused atom embedding + focal head
#   h     = x @ W_emb + b_emb                      (TILE_N, H)      f32 acc
#   focal = h @ W_head_pad + b_head_pad            (TILE_N, 128)    col 0 real
# ----------------------------------------------------------------------------
def _emb_focal_kernel(x_ref, w_emb_ref, b_emb_ref, w_head_ref, b_head_ref,
                      h_ref, f_ref):
    h = (jnp.dot(x_ref[...], w_emb_ref[...],
                 preferred_element_type=jnp.float32)
         + b_emb_ref[...])
    h_ref[...] = h.astype(h_ref.dtype)
    f = (jnp.dot(h.astype(w_head_ref.dtype), w_head_ref[...],
                 preferred_element_type=jnp.float32)
         + b_head_ref[...])
    f_ref[...] = f.astype(f_ref.dtype)


def pallas_emb_focal(x, w_emb, b_emb, w_head, b_head, *,
                     tile_n=512, compute_dtype=jnp.float32):
    """Fused  h = x @ W_emb + b_emb  and  focal = h @ w_head + b_head.

    x: (N, Din), w_emb: (Din, H), b_emb: (1, H), w_head: (H, 1), b_head: (1, 1)
    Returns (h (N, H) f32, focal (N, 1) f32).
    """
    n, din = x.shape
    h_dim = w_emb.shape[1]

    # Lane-dense padded head weights: real head lives in column 0.
    w_head_p = jnp.zeros((h_dim, HEAD_PAD), compute_dtype).at[:, :1].set(
        w_head.astype(compute_dtype))
    b_head_p = jnp.zeros((1, HEAD_PAD), jnp.float32).at[:, :1].set(
        b_head.astype(jnp.float32))

    xc = x.astype(compute_dtype)
    wc = w_emb.astype(compute_dtype)
    bc = b_emb.astype(jnp.float32)

    # Row tiling: tile is a multiple of 8 sublanes; pad rows, slice back after.
    tile = min(tile_n, _round_up(n, 8))
    n_pad = _round_up(n, tile)
    if n_pad != n:
        xc = jnp.pad(xc, ((0, n_pad - n), (0, 0)))

    h_out, f_out = pl.pallas_call(
        _emb_focal_kernel,
        out_shape=(jax.ShapeDtypeStruct((n_pad, h_dim), jnp.float32),
                   jax.ShapeDtypeStruct((n_pad, HEAD_PAD), jnp.float32)),
        grid=(n_pad // tile,),
        in_specs=[
            pl.BlockSpec((tile, din), lambda i: (i, 0)),       # x: row-tiled
            pl.BlockSpec((din, h_dim), lambda i: (0, 0)),      # W_emb: resident
            pl.BlockSpec((1, h_dim), lambda i: (0, 0)),        # b_emb: resident
            pl.BlockSpec((h_dim, HEAD_PAD), lambda i: (0, 0)),  # W_head: resident
            pl.BlockSpec((1, HEAD_PAD), lambda i: (0, 0)),      # b_head: resident
        ],
        out_specs=(pl.BlockSpec((tile, h_dim), lambda i: (i, 0)),
                   pl.BlockSpec((tile, HEAD_PAD), lambda i: (i, 0))),
        compiler_params=pltpu.CompilerParams(
            dimension_semantics=("parallel",)),
    )(xc, wc, bc, w_head_p, b_head_p)

    return h_out[:n], f_out[:n, :1]


# ----------------------------------------------------------------------------
# Plain-JAX glue (matches torch compose_context_stable semantics:
# per graph, protein nodes first, then ligand nodes; stable within groups)
# ----------------------------------------------------------------------------
def compose_context_stable(h_protein, h_ligand, pos_protein, pos_ligand,
                           batch_protein, batch_ligand):
    batch_all = jnp.concatenate([batch_protein, batch_ligand], axis=0)
    is_ligand = jnp.concatenate(
        [jnp.zeros_like(batch_protein), jnp.ones_like(batch_ligand)], axis=0)
    key = batch_all * 2 + is_ligand          # protein (0) before ligand (1)
    order = jnp.argsort(key, stable=True)
    h_all = jnp.concatenate([h_protein, h_ligand], axis=0)
    pos_all = jnp.concatenate([pos_protein, pos_ligand], axis=0)
    h_ctx = h_all[order]
    pos_ctx = pos_all[order]
    batch_ctx = batch_all[order]
    mask_protein = is_ligand[order] == 0
    return h_ctx, pos_ctx, batch_ctx, mask_protein, order


# ----------------------------------------------------------------------------
# FLAG parameters + forward
# ----------------------------------------------------------------------------
def init_linear(key, din, dout):
    # PyTorch nn.Linear default init: U(-1/sqrt(fan_in), 1/sqrt(fan_in))
    kw, kb = jax.random.split(key)
    bound = 1.0 / jnp.sqrt(jnp.float32(din))
    w = jax.random.uniform(kw, (din, dout), jnp.float32, -bound, bound)
    b = jax.random.uniform(kb, (1, dout), jnp.float32, -bound, bound)
    return w, b


def init_flag_params(key, protein_feat_dim, ligand_feat_dim, hidden):
    k1, k2, k3, k4 = jax.random.split(key, 4)
    return {
        "protein_atom_emb": init_linear(k1, protein_feat_dim, hidden),
        "ligand_atom_emb": init_linear(k2, ligand_feat_dim, hidden),
        # MLP(in_dim=hidden, out_dim=1, num_layers=1) == single Linear
        "focal_mlp_protein": init_linear(k3, hidden, 1),
        "focal_mlp_ligand": init_linear(k4, hidden, 1),
    }


@functools.partial(jax.jit, static_argnames=("compute_dtype",))
def flag_forward(params, protein_pos, protein_atom_feature, ligand_pos,
                 ligand_atom_feature, batch_protein, batch_ligand,
                 compute_dtype=jnp.float32):
    wp_emb, bp_emb = params["protein_atom_emb"]
    wl_emb, bl_emb = params["ligand_atom_emb"]
    wp_head, bp_head = params["focal_mlp_protein"]
    wl_head, bl_head = params["focal_mlp_ligand"]

    # Fused embedding + focal head per node type (single Pallas kernel each).
    # TODO(synk): `self.encoder = get_encoder(config.encoder)` is an external
    # 3D GNN whose definition is not provided; it is treated as identity, which
    # is what allows folding the (per-row linear) focal heads into the
    # embedding kernels.  With a real encoder, move the focal heads after it.
    h_protein, f_protein = pallas_emb_focal(
        protein_atom_feature, wp_emb, bp_emb, wp_head, bp_head,
        compute_dtype=compute_dtype)
    h_ligand, f_ligand = pallas_emb_focal(
        ligand_atom_feature, wl_emb, bl_emb, wl_head, bl_head,
        compute_dtype=compute_dtype)

    # Compose context (row permutation; plain-JAX glue).
    h_ctx, pos_ctx, batch_ctx, protein_mask, order = compose_context_stable(
        h_protein, h_ligand, protein_pos, ligand_pos,
        batch_protein, batch_ligand)

    # Apply the same permutation to the per-node focal scores.
    f_all = jnp.concatenate([f_protein, f_ligand], axis=0)
    f_ctx = f_all[order]

    # focal_pred = cat([protein-node scores, ligand-node scores]) in ctx order.
    # argsort-on-mask instead of jnp.nonzero -> static shapes, jit-compatible.
    reorder = jnp.argsort(
        jnp.where(protein_mask, 0, 1).astype(jnp.int32), stable=True)
    focal_pred = f_ctx[reorder]

    return focal_pred, protein_mask, h_ctx


# ----------------------------------------------------------------------------
# Main
# ----------------------------------------------------------------------------
if __name__ == "__main__":
    key = jax.random.PRNGKey(0)
    k_par, k_pf, k_lf, k_pp, k_lp = jax.random.split(key, 5)

    PROTEIN_FEAT = 16
    LIGAND_FEAT = 12
    HIDDEN = 32
    N_PROTEIN = 10
    N_LIGAND = 6

    params = init_flag_params(k_par, PROTEIN_FEAT, LIGAND_FEAT, HIDDEN)

    protein_atom_feature = jax.random.normal(
        k_pf, (N_PROTEIN, PROTEIN_FEAT), jnp.float32)
    ligand_atom_feature = jax.random.normal(
        k_lf, (N_LIGAND, LIGAND_FEAT), jnp.float32)
    protein_pos = jax.random.normal(k_pp, (N_PROTEIN, 3), jnp.float32)
    ligand_pos = jax.random.normal(k_lp, (N_LIGAND, 3), jnp.float32)
    batch_protein = jnp.array([0] * 5 + [1] * 5, dtype=jnp.int32)
    batch_ligand = jnp.array([0] * 3 + [1] * 3, dtype=jnp.int32)

    # f32 path (default)
    focal_pred, protein_mask, h_ctx = flag_forward(
        params, protein_pos, protein_atom_feature, ligand_pos,
        ligand_atom_feature, batch_protein, batch_ligand)
    jax.block_until_ready((focal_pred, protein_mask, h_ctx))

    # ---------------- reference (plain JAX, eager) ----------------
    wp_emb, bp_emb = params["protein_atom_emb"]
    wl_emb, bl_emb = params["ligand_atom_emb"]
    wp_head, bp_head = params["focal_mlp_protein"]
    wl_head, bl_head = params["focal_mlp_ligand"]

    h_p_ref = protein_atom_feature @ wp_emb + bp_emb
    h_l_ref = ligand_atom_feature @ wl_emb + bl_emb
    h_ctx_ref, _, _, mask_ref, _ = compose_context_stable(
        h_p_ref, h_l_ref, protein_pos, ligand_pos, batch_protein, batch_ligand)
    prot_rows = jnp.nonzero(mask_ref)[0]   # eager here, not inside jit
    lig_rows = jnp.nonzero(~mask_ref)[0]
    focal_ref = jnp.concatenate(
        [h_ctx_ref[prot_rows] @ wp_head + bp_head,
         h_ctx_ref[lig_rows] @ wl_head + bl_head], axis=0)

    assert focal_pred.shape == (N_PROTEIN + N_LIGAND, 1)
    assert h_ctx.shape == (N_PROTEIN + N_LIGAND, HIDDEN)
    assert bool(jnp.all(protein_mask == mask_ref))
    assert jnp.allclose(h_ctx, h_ctx_ref, atol=1e-4)
    assert jnp.allclose(focal_pred, focal_ref, atol=1e-4)

    # bf16-input path (v6e / v7x MXU-friendly), f32 accumulation -> loose tol.
    focal_bf, mask_bf, h_ctx_bf = flag_forward(
        params, protein_pos, protein_atom_feature, ligand_pos,
        ligand_atom_feature, batch_protein, batch_ligand,
        compute_dtype=jnp.bfloat16)
    jax.block_until_ready((focal_bf, mask_bf, h_ctx_bf))
    assert bool(jnp.all(mask_bf == mask_ref))
    assert jnp.allclose(h_ctx_bf, h_ctx_ref, atol=5e-2)
    assert jnp.allclose(focal_bf, focal_ref, atol=5e-2)

    print("KERNEL_OK")
</pallas_src>

<mosaic_0001>
module attributes {stable_mosaic.version = 11 : i64} {
  func.func @_emb_focal_kernel(%arg0: i32, %arg1: memref<8x12xf32, #tpu.memory_space<vmem>>, %arg2: memref<12x32xf32, #tpu.memory_space<vmem>>, %arg3: memref<1x32xf32, #tpu.memory_space<vmem>>, %arg4: memref<32x128xf32, #tpu.memory_space<vmem>>, %arg5: memref<1x128xf32, #tpu.memory_space<vmem>>, %arg6: memref<8x32xf32, #tpu.memory_space<vmem>>, %arg7: memref<8x128xf32, #tpu.memory_space<vmem>>) attributes {dimension_semantics = [#tpu.dimension_semantics<parallel>], iteration_bounds = array<i64: 1>, scalar_prefetch = 0 : i64, scratch_operands = 0 : i64, tpu.core_type = #tpu.core_type<tc>, window_params = [{transform_indices = @transform_0, window_bounds = array<i64: 8, 12>}, {pipeline_mode = #tpu.pipeline_mode<synchronous>, transform_indices = @transform_1, window_bounds = array<i64: 12, 32>}, {pipeline_mode = #tpu.pipeline_mode<synchronous>, transform_indices = @transform_2, window_bounds = array<i64: 1, 32>}, {pipeline_mode = #tpu.pipeline_mode<synchronous>, transform_indices = @transform_3, window_bounds = array<i64: 32, 128>}, {pipeline_mode = #tpu.pipeline_mode<synchronous>, transform_indices = @transform_4, window_bounds = array<i64: 1, 128>}, {transform_indices = @transform_5, window_bounds = array<i64: 8, 32>}, {transform_indices = @transform_6, window_bounds = array<i64: 8, 128>}]} {
    %c0 = arith.constant 0 : index
    %c0_0 = arith.constant 0 : index
    %0 = vector.load %arg1[%c0, %c0_0] : memref<8x12xf32, #tpu.memory_space<vmem>>, vector<8x12xf32>
    %c0_1 = arith.constant 0 : index
    %c0_2 = arith.constant 0 : index
    %1 = vector.load %arg2[%c0_1, %c0_2] : memref<12x32xf32, #tpu.memory_space<vmem>>, vector<12x32xf32>
    %cst = arith.constant dense<0.000000e+00> : vector<8x32xf32>
    %2 = tpu.matmul %0, %1, %cst {dimension_numbers = #tpu.dot_dimension_numbers<[1], [0], [0], [1], [0, 0, 1, 1], [], []>} : vector<8x12xf32>, vector<12x32xf32>, vector<8x32xf32> -> vector<8x32xf32>
    %c0_3 = arith.constant 0 : index
    %c0_4 = arith.constant 0 : index
    %3 = vector.load %arg3[%c0_3, %c0_4] : memref<1x32xf32, #tpu.memory_space<vmem>>, vector<1x32xf32>
    %4 = vector.broadcast %3 : vector<1x32xf32> to vector<8x32xf32>
    %5 = arith.addf %2, %4 : vector<8x32xf32>
    %c0_5 = arith.constant 0 : index
    %c0_6 = arith.constant 0 : index
    %6 = vector.load %arg6[%c0_5, %c0_6] : memref<8x32xf32, #tpu.memory_space<vmem>>, vector<8x32xf32>
    tpu.vector_store %arg6[%c0_5, %c0_6], %5 {strides = array<i32>} : memref<8x32xf32, #tpu.memory_space<vmem>>, vector<8x32xf32>,
    %c0_7 = arith.constant 0 : index
    %c0_8 = arith.constant 0 : index
    %7 = vector.load %arg4[%c0_7, %c0_8] : memref<32x128xf32, #tpu.memory_space<vmem>>, vector<32x128xf32>
    %cst_9 = arith.constant dense<0.000000e+00> : vector<8x128xf32>
    %8 = tpu.matmul %5, %7, %cst_9 {dimension_numbers = #tpu.dot_dimension_numbers<[1], [0], [0], [1], [0, 0, 1, 1], [], []>} : vector<8x32xf32>, vector<32x128xf32>, vector<8x128xf32> -> vector<8x128xf32>
    %c0_10 = arith.constant 0 : index
    %c0_11 = arith.constant 0 : index
    %9 = vector.load %arg5[%c0_10, %c0_11] : memref<1x128xf32, #tpu.memory_space<vmem>>, vector<1x128xf32>
    %10 = vector.broadcast %9 : vector<1x128xf32> to vector<8x128xf32>
    %11 = arith.addf %8, %10 : vector<8x128xf32>
    %c0_12 = arith.constant 0 : index
    %c0_13 = arith.constant 0 : index
    %12 = vector.load %arg7[%c0_12, %c0_13] : memref<8x128xf32, #tpu.memory_space<vmem>>, vector<8x128xf32>
    tpu.vector_store %arg7[%c0_12, %c0_13], %11 {strides = array<i32>} : memref<8x128xf32, #tpu.memory_space<vmem>>, vector<8x128xf32>,
    return
  }
  func.func @transform_0(%arg0: i32) -> (i32, i32) {
    %c0_i32 = arith.constant 0 : i32
    %c0_i32_0 = arith.constant 0 : i32
    return %arg0, %c0_i32 : i32, i32
  }
  func.func @transform_1(%arg0: i32) -> (i32, i32) {
    %c0_i32 = arith.constant 0 : i32
    %c0_i32_0 = arith.constant 0 : i32
    %c0_i32_1 = arith.constant 0 : i32
    return %c0_i32, %c0_i32_0 : i32, i32
  }
  func.func @transform_2(%arg0: i32) -> (i32, i32) {
    %c0_i32 = arith.constant 0 : i32
    %c0_i32_0 = arith.constant 0 : i32
    %c0_i32_1 = arith.constant 0 : i32
    return %c0_i32, %c0_i32_0 : i32, i32
  }
  func.func @transform_3(%arg0: i32) -> (i32, i32) {
    %c0_i32 = arith.constant 0 : i32
    %c0_i32_0 = arith.constant 0 : i32
    %c0_i32_1 = arith.constant 0 : i32
    return %c0_i32, %c0_i32_0 : i32, i32
  }
  func.func @transform_4(%arg0: i32) -> (i32, i32) {
    %c0_i32 = arith.constant 0 : i32
    %c0_i32_0 = arith.constant 0 : i32
    %c0_i32_1 = arith.constant 0 : i32
    return %c0_i32, %c0_i32_0 : i32, i32
  }
  func.func @transform_5(%arg0: i32) -> (i32, i32) {
    %c0_i32 = arith.constant 0 : i32
    %c0_i32_0 = arith.constant 0 : i32
    return %arg0, %c0_i32 : i32, i32
  }
  func.func @transform_6(%arg0: i32) -> (i32, i32) {
    %c0_i32 = arith.constant 0 : i32
    %c0_i32_0 = arith.constant 0 : i32
    return %arg0, %c0_i32 : i32, i32
  }
}

module attributes {stable_mosaic.version = 11 : i64} {
  func.func @_emb_focal_kernel(%arg0: i32, %arg1: memref<16x16xf32, #tpu.memory_space<vmem>>, %arg2: memref<16x32xf32, #tpu.memory_space<vmem>>, %arg3: memref<1x32xf32, #tpu.memory_space<vmem>>, %arg4: memref<32x128xf32, #tpu.memory_space<vmem>>, %arg5: memref<1x128xf32, #tpu.memory_space<vmem>>, %arg6: memref<16x32xf32, #tpu.memory_space<vmem>>, %arg7: memref<16x128xf32, #tpu.memory_space<vmem>>) attributes {dimension_semantics = [#tpu.dimension_semantics<parallel>], iteration_bounds = array<i64: 1>, scalar_prefetch = 0 : i64, scratch_operands = 0 : i64, tpu.core_type = #tpu.core_type<tc>, window_params = [{transform_indices = @transform_0, window_bounds = array<i64: 16, 16>}, {pipeline_mode = #tpu.pipeline_mode<synchronous>, transform_indices = @transform_1, window_bounds = array<i64: 16, 32>}, {pipeline_mode = #tpu.pipeline_mode<synchronous>, transform_indices = @transform_2, window_bounds = array<i64: 1, 32>}, {pipeline_mode = #tpu.pipeline_mode<synchronous>, transform_indices = @transform_3, window_bounds = array<i64: 32, 128>}, {pipeline_mode = #tpu.pipeline_mode<synchronous>, transform_indices = @transform_4, window_bounds = array<i64: 1, 128>}, {transform_indices = @transform_5, window_bounds = array<i64: 16, 32>}, {transform_indices = @transform_6, window_bounds = array<i64: 16, 128>}]} {
    %c0 = arith.constant 0 : index
    %c0_0 = arith.constant 0 : index
    %0 = vector.load %arg1[%c0, %c0_0] : memref<16x16xf32, #tpu.memory_space<vmem>>, vector<16x16xf32>
    %c0_1 = arith.constant 0 : index
    %c0_2 = arith.constant 0 : index
    %1 = vector.load %arg2[%c0_1, %c0_2] : memref<16x32xf32, #tpu.memory_space<vmem>>, vector<16x32xf32>
    %cst = arith.constant dense<0.000000e+00> : vector<16x32xf32>
    %2 = tpu.matmul %0, %1, %cst {dimension_numbers = #tpu.dot_dimension_numbers<[1], [0], [0], [1], [0, 0, 1, 1], [], []>} : vector<16x16xf32>, vector<16x32xf32>, vector<16x32xf32> -> vector<16x32xf32>
    %c0_3 = arith.constant 0 : index
    %c0_4 = arith.constant 0 : index
    %3 = vector.load %arg3[%c0_3, %c0_4] : memref<1x32xf32, #tpu.memory_space<vmem>>, vector<1x32xf32>
    %4 = vector.broadcast %3 : vector<1x32xf32> to vector<16x32xf32>
    %5 = arith.addf %2, %4 : vector<16x32xf32>
    %c0_5 = arith.constant 0 : index
    %c0_6 = arith.constant 0 : index
    %6 = vector.load %arg6[%c0_5, %c0_6] : memref<16x32xf32, #tpu.memory_space<vmem>>, vector<16x32xf32>
    tpu.vector_store %arg6[%c0_5, %c0_6], %5 {strides = array<i32>} : memref<16x32xf32, #tpu.memory_space<vmem>>, vector<16x32xf32>,
    %c0_7 = arith.constant 0 : index
    %c0_8 = arith.constant 0 : index
    %7 = vector.load %arg4[%c0_7, %c0_8] : memref<32x128xf32, #tpu.memory_space<vmem>>, vector<32x128xf32>
    %cst_9 = arith.constant dense<0.000000e+00> : vector<16x128xf32>
    %8 = tpu.matmul %5, %7, %cst_9 {dimension_numbers = #tpu.dot_dimension_numbers<[1], [0], [0], [1], [0, 0, 1, 1], [], []>} : vector<16x32xf32>, vector<32x128xf32>, vector<16x128xf32> -> vector<16x128xf32>
    %c0_10 = arith.constant 0 : index
    %c0_11 = arith.constant 0 : index
    %9 = vector.load %arg5[%c0_10, %c0_11] : memref<1x128xf32, #tpu.memory_space<vmem>>, vector<1x128xf32>
    %10 = vector.broadcast %9 : vector<1x128xf32> to vector<16x128xf32>
    %11 = arith.addf %8, %10 : vector<16x128xf32>
    %c0_12 = arith.constant 0 : index
    %c0_13 = arith.constant 0 : index
    %12 = vector.load %arg7[%c0_12, %c0_13] : memref<16x128xf32, #tpu.memory_space<vmem>>, vector<16x128xf32>
    tpu.vector_store %arg7[%c0_12, %c0_13], %11 {strides = array<i32>} : memref<16x128xf32, #tpu.memory_space<vmem>>, vector<16x128xf32>,
    return
  }
  func.func @transform_0(%arg0: i32) -> (i32, i32) {
    %c0_i32 = arith.constant 0 : i32
    %c0_i32_0 = arith.constant 0 : i32
    return %arg0, %c0_i32 : i32, i32
  }
  func.func @transform_1(%arg0: i32) -> (i32, i32) {
    %c0_i32 = arith.constant 0 : i32
    %c0_i32_0 = arith.constant 0 : i32
    %c0_i32_1 = arith.constant 0 : i32
    return %c0_i32, %c0_i32_0 : i32, i32
  }
  func.func @transform_2(%arg0: i32) -> (i32, i32) {
    %c0_i32 = arith.constant 0 : i32
    %c0_i32_0 = arith.constant 0 : i32
    %c0_i32_1 = arith.constant 0 : i32
    return %c0_i32, %c0_i32_0 : i32, i32
  }
  func.func @transform_3(%arg0: i32) -> (i32, i32) {
    %c0_i32 = arith.constant 0 : i32
    %c0_i32_0 = arith.constant 0 : i32
    %c0_i32_1 = arith.constant 0 : i32
    return %c0_i32, %c0_i32_0 : i32, i32
  }
  func.func @transform_4(%arg0: i32) -> (i32, i32) {
    %c0_i32 = arith.constant 0 : i32
    %c0_i32_0 = arith.constant 0 : i32
    %c0_i32_1 = arith.constant 0 : i32
    return %c0_i32, %c0_i32_0 : i32, i32
  }
  func.func @transform_5(%arg0: i32) -> (i32, i32) {
    %c0_i32 = arith.constant 0 : i32
    %c0_i32_0 = arith.constant 0 : i32
    return %arg0, %c0_i32 : i32, i32
  }
  func.func @transform_6(%arg0: i32) -> (i32, i32) {
    %c0_i32 = arith.constant 0 : i32
    %c0_i32_0 = arith.constant 0 : i32
    return %arg0, %c0_i32 : i32, i32
  }
}

</mosaic_0001>

<bundles_post_ra>
// kernel: flag_forward.3
= control target key start
LH: loop header
LB: loop body
LE: loop exit
PB: predicated region body
PF: predicated region fallthrough
CT: control target
= control target key end

     0   :  { %vm33_vm0 = vcmask 1043456   ;;  %vm29_vm1 = vcmask 97280   ;;  %vm57_vm2 = vcmask 261120   ;;  %s172_s1 = inlined_call_operand.vmem [shape: f32[12,32], index: 1, kind: input, shape index: {}]   ;;  %s173_s0 = inlined_call_operand.vmem [shape: f32[8,12], index: 0, kind: input, shape index: {}]   ;;  %s174_s3 = inlined_call_operand.vmem [shape: f32[32,128], index: 3, kind: input, shape index: {}]   ;;  %s175_s2 = inlined_call_operand.vmem [shape: f32[1,32], index: 2, kind: input, shape index: {}]   ;;  %s176_s4 = inlined_call_operand.vmem [shape: f32[1,128], index: 4, kind: input, shape index: {}]   ;;  %s177_s5 = inlined_call_operand.vmem [shape: f32[8,32], index: 5, kind: output, shape index: {0}]   ;;  %s178_s6 = inlined_call_operand.vmem [shape: f32[8,128], index: 6, kind: output, shape index: {1}]  }
   0x1   :  { %v24_v0 = vld [vmem:[%s172_s1 + $0x8] sm:$0xf]  ;;  %v23_v1 = vld [vmem:[%s172_s1] sm:$0xff]  ;;  %v62_v3 = vld [vmem:[%s174_s3 + $0x18] sm:$0xff] }
   0x2   :  { %v22_v2 = vld [vmem:[%s173_s0] sm:$0xff]  ;;  %99 = vmatpush.msk.msra.mxu0 %vm33_vm0, %v24_v0  ;;  %v61_v4 = vld [vmem:[%s174_s3 + $0x10] sm:$0xff]  ;;  %82 = vmatpush.msra.mxu1 %v62_v3  ;;  %v60_v5 = vld [vmem:[%s174_s3 + $0x8] sm:$0xff] }
   0x3   :  { %v59_v6 = vld [vmem:[%s174_s3] sm:$0xff] }
   0x4   :  { %52 = vmatpush.msra.mxu0 %v23_v1  ;;  %83 = vmatpush.msra.mxu1 %v61_v4  ;;  %v102_v7 = vld [vmem:[%s175_s2] ss:$0 sm:$0xff] }
   0x5   :  { %100 = vmatmul.msk.f32.vlgmr.msra.gmra.mxu0 %vm29_vm1, %v22_v2  ;;  %v103_v10 = vld [vmem:[%s176_s4] ss:$0 sm:$0xff] }
   0x6   :  { %84 = vmatpush.msra.mxu1 %v60_v5 }
   0x8   :  { %85 = vmatpush.msra.mxu1 %v59_v6 }
  0x82   :  { %v54_v8 = vpop.f32.mrf.mxu0 }
  0x83   :  { %v55_v9 = vadd.f32 %v102_v7, %v54_v8 }
  0x85   :  { %58 = vst.msk [vmem:[%s177_s5] sm:$0xff] %vm57_vm2, %v55_v9  ;;  %101 = vmatmul.msk.f32.vlgmr.msra.gmra.mxu1 %vm57_vm2, %v55_v9 }
 0x102   :  { %v87_v11 = vpop.f32.mrf.mxu1 }
 0x103   :  { %v88_v12 = vadd.f32 %v103_v10, %v87_v11 }
 0x105   :  { %90 = vst [vmem:[%s178_s6] sm:$0xff] %v88_v12 }

// kernel: flag_forward.2
= control target key start
LH: loop header
LB: loop body
LE: loop exit
PB: predicated region body
PF: predicated region fallthrough
CT: control target
= control target key end

     0   :  { %vm30_vm0 = vcmask 130048   ;;  %vm60_vm1 = vcmask 261120   ;;  %s199_s1 = inlined_call_operand.vmem [shape: f32[16,32], index: 1, kind: input, shape index: {}]   ;;  %s200_s0 = inlined_call_operand.vmem [shape: f32[16,16], index: 0, kind: input, shape index: {}]   ;;  %s201_s3 = inlined_call_operand.vmem [shape: f32[32,128], index: 3, kind: input, shape index: {}]   ;;  %s202_s2 = inlined_call_operand.vmem [shape: f32[1,32], index: 2, kind: input, shape index: {}]   ;;  %s203_s4 = inlined_call_operand.vmem [shape: f32[1,128], index: 4, kind: input, shape index: {}]   ;;  %s204_s5 = inlined_call_operand.vmem [shape: f32[16,32], index: 5, kind: output, shape index: {0}]   ;;  %s205_s6 = inlined_call_operand.vmem [shape: f32[16,128], index: 6, kind: output, shape index: {1}]  }
   0x1   :  { %v25_v0 = vld [vmem:[%s199_s1 + $0x8] sm:$0xff]  ;;  %v24_v1 = vld [vmem:[%s199_s1] sm:$0xff]  ;;  %v66_v4 = vld [vmem:[%s201_s3 + $0x18] sm:$0xff] }
   0x2   :  { %114 = vmatpush.msra.mxu3 %v25_v0  ;;  %v23_v2 = vld [vmem:[%s200_s0 + $0x8] sm:$0xff]  ;;  %51 = vmatpush.msra.mxu0 %v25_v0  ;;  %v22_v3 = vld [vmem:[%s200_s0] sm:$0xff]  ;;  %v65_v5 = vld [vmem:[%s201_s3 + $0x10] sm:$0xff] }
   0x3   :  { %116 = vmatpush.msra.mxu2 %v66_v4  ;;  %89 = vmatpush.msra.mxu1 %v66_v4  ;;  %v64_v6 = vld [vmem:[%s201_s3 + $0x8] sm:$0xff]  ;;  %v63_v7 = vld [vmem:[%s201_s3] sm:$0xff] }
   0x4   :  { %115 = vmatpush.msra.mxu3 %v24_v1  ;;  %52 = vmatpush.msra.mxu0 %v24_v1  ;;  %v120_v8 = vld [vmem:[%s202_s2] ss:$0 sm:$0xff] }
   0x5   :  { %111 = vmatmul.msk.f32.vlgmr.msra.gmra.mxu3 %vm30_vm0, %v23_v2  ;;  %110 = vmatmul.msk.f32.vlgmr.msra.gmra.mxu0 %vm30_vm0, %v22_v3  ;;  %v121_v13 = vld [vmem:[%s203_s4] ss:$0 sm:$0xff] }
   0x6   :  { %117 = vmatpush.msra.mxu2 %v65_v5  ;;  %90 = vmatpush.msra.mxu1 %v65_v5 }
   0x8   :  { %118 = vmatpush.msra.mxu2 %v64_v6  ;;  %91 = vmatpush.msra.mxu1 %v64_v6 }
   0xa   :  { %119 = vmatpush.msra.mxu2 %v63_v7  ;;  %92 = vmatpush.msra.mxu1 %v63_v7 }
  0x82   :  { %v54_v9 = vpop.f32.mrf.mxu0 }
  0x83   :  { %v55_v10 = vadd.f32 %v120_v8, %v54_v9 }
  0x85   :  { %61 = vst.msk [vmem:[%s204_s5] sm:$0xff] %vm60_vm1, %v55_v10  ;;  %112 = vmatmul.msk.f32.vlgmr.msra.gmra.mxu1 %vm60_vm1, %v55_v10 }
  0x88   :  { %v57_v11 = vpop.f32.mrf.mxu3 }
  0x89   :  { %v58_v12 = vadd.f32 %v120_v8, %v57_v11 }
  0x8b   :  { %62 = vst.msk [vmem:[%s204_s5 + $0x8] sm:$0xff] %vm60_vm1, %v58_v12  ;;  %113 = vmatmul.msk.f32.vlgmr.msra.gmra.mxu2 %vm60_vm1, %v58_v12 }
 0x102   :  { %v94_v14 = vpop.f32.mrf.mxu1 }
 0x103   :  { %v95_v15 = vadd.f32 %v121_v13, %v94_v14 }
 0x105   :  { %100 = vst [vmem:[%s205_s6] sm:$0xff] %v95_v15 }
 0x10e   :  { %v97_v16 = vpop.f32.mrf.mxu2 }
 0x10f   :  { %v98_v17 = vadd.f32 %v121_v13, %v97_v16 }
 0x111   :  { %101 = vst [vmem:[%s205_s6 + $0x8] sm:$0xff] %v98_v17 }

</bundles_post_ra>
